<compile_context>
chip_gen: v7x
topology: tpu7x:2x2x1
jax: 0.10.0
libtpu: 0.0.40
codegen_flags: <defaults>
</compile_context>

<pallas_src>
import jax
import jax.numpy as jnp
from jax.experimental import pallas as pl
from jax.experimental.pallas import tpu as pltpu


def _chunk_bounds(rows, n_chunks):
    """Static, roughly equal (start, size) chunks along the leading axis."""
    base = rows // n_chunks
    rem = rows % n_chunks
    bounds = []
    start = 0
    for i in range(n_chunks):
        size = base + (1 if i < rem else 0)
        if size > 0:
            bounds.append((start, size))
            start += size
    return bounds


def _make_dma_copy_kernel(bounds):
    """Kernel that copies `x_ref` -> `o_ref` via chunked HBM->HBM DMAs."""

    def kernel(x_ref, o_ref, sems):
        # Issue every chunk DMA first (keeps them all in flight), then wait.
        copies = []
        for i, (start, size) in enumerate(bounds):
            cp = pltpu.make_async_copy(
                x_ref.at[pl.ds(start, size)],
                o_ref.at[pl.ds(start, size)],
                sems.at[i],
            )
            cp.start()
            copies.append(cp)
        for cp in copies:
            cp.wait()

    return kernel


def identity_copy(x, *, max_chunks=4, min_chunk_bytes=4 * 1024 * 1024):
    """Materialize a fresh copy of `x` with direct chunked HBM->HBM DMA.

    Only needed when the caller requires a distinct output buffer; the cheap
    identity path is simply `return x` (see IdentityPallas.__call__).
    """
    if x.size == 0:
        # Nothing to copy; a fresh zero-byte buffer is indistinguishable.
        return x

    orig_shape = x.shape
    squeeze = False
    if x.ndim == 0:
        # 0-d scalar: give the DMA a 2-D view (reshape of a scalar is free).
        x = x.reshape(1, 1)
        squeeze = True

    itemsize = jnp.dtype(x.dtype).itemsize
    total_bytes = x.size * itemsize
    rows = x.shape[0]

    # Keep a few DMAs in flight for large arrays (>= ~8 MiB with a splittable
    # leading dim); otherwise one whole-array DMA is already optimal.
    n_chunks = 1
    if rows >= 2 and total_bytes >= 2 * min_chunk_bytes:
        n_chunks = int(min(max_chunks, rows, max(1, total_bytes // min_chunk_bytes)))
    bounds = _chunk_bounds(rows, n_chunks)

    y = pl.pallas_call(
        _make_dma_copy_kernel(bounds),
        out_shape=jax.ShapeDtypeStruct(x.shape, x.dtype),
        # Both operands stay in HBM; no auto-DMA, no VMEM staging, no grid.
        in_specs=[pl.BlockSpec(memory_space=pl.ANY)],
        out_specs=pl.BlockSpec(memory_space=pl.ANY),
        scratch_shapes=[pltpu.SemaphoreType.DMA((len(bounds),))],
        # Purely memory-bound hint for XLA's scheduler (read n bytes, write n bytes).
        cost_estimate=pl.CostEstimate(
            flops=0, transcendentals=0, bytes_accessed=2 * total_bytes
        ),
    )(x)

    if squeeze:
        y = y.reshape(orig_shape)
    return y


class IdentityPallas:
    """Mirror of the PyTorch Identity module (no parameters)."""

    def __init__(self, d):
        self.in_features = d
        self.out_features = d

    def __call__(self, x, *, materialize=False):
        if not materialize:
            # Identity has zero compute; returning the input unchanged is the
            # exact forward semantics and costs no HBM traffic at all.
            return x
        # Explicitly requested fresh buffer -> direct HBM->HBM DMA copy.
        return identity_copy(x)


if __name__ == "__main__":
    key = jax.random.PRNGKey(0)
    B, D = 8, 32
    x = jax.random.normal(key, (B, D), dtype=jnp.float32)

    mod = IdentityPallas(D)

    # Default (zero-cost) identity path.
    y_fast = jax.block_until_ready(mod(x))
    assert y_fast.shape == x.shape and y_fast.dtype == x.dtype
    assert bool(jnp.all(y_fast == x))

    # Pallas DMA-copy path (exercises the kernel on TPU).
    y_copy = jax.block_until_ready(mod(x, materialize=True))
    assert y_copy.shape == x.shape and y_copy.dtype == x.dtype
    assert bool(jnp.all(y_copy == x))

    print("KERNEL_OK")
</pallas_src>

<mosaic_0001>
module attributes {stable_mosaic.version = 11 : i64} {
  func.func @kernel(%arg0: memref<8x32xf32, #tpu.memory_space<any>>, %arg1: memref<8x32xf32, #tpu.memory_space<any>>, %arg2: memref<1x!tpu.dma_semaphore, #tpu.memory_space<semaphore_mem>>) attributes {dimension_semantics = [], scalar_prefetch = 0 : i64, scratch_operands = 1 : i64, tpu.core_type = #tpu.core_type<tc>} {
    %c0_i32 = arith.constant 0 : i32
    %c0_i32_0 = arith.constant 0 : i32
    %c0_i32_1 = arith.constant 0 : i32
    %0 = tpu.memref_slice %arg0[%c0_i32_0, %c0_i32_1] : memref<8x32xf32, #tpu.memory_space<any>> -> memref<8x32xf32, #tpu.memory_space<any>>
    %c0_i32_2 = arith.constant 0 : i32
    %c0_i32_3 = arith.constant 0 : i32
    %1 = tpu.memref_slice %arg1[%c0_i32_2, %c0_i32_3] : memref<8x32xf32, #tpu.memory_space<any>> -> memref<8x32xf32, #tpu.memory_space<any>>
    %2 = tpu.memref_slice %arg2[%c0_i32] : memref<1x!tpu.dma_semaphore, #tpu.memory_space<semaphore_mem>> -> memref<1x!tpu.dma_semaphore, #tpu.memory_space<semaphore_mem>>
    %3 = tpu.memref_squeeze %2 : memref<1x!tpu.dma_semaphore, #tpu.memory_space<semaphore_mem>> -> memref<!tpu.dma_semaphore, #tpu.memory_space<semaphore_mem>>
    tpu.enqueue_dma source(%0 : memref<8x32xf32, #tpu.memory_space<any>>) target(%1 : memref<8x32xf32, #tpu.memory_space<any>>) target_semaphore(%3 : memref<!tpu.dma_semaphore, #tpu.memory_space<semaphore_mem>>)
    %c0_i32_4 = arith.constant 0 : i32
    %c0_i32_5 = arith.constant 0 : i32
    %c0_i32_6 = arith.constant 0 : i32
    %4 = tpu.memref_slice %arg0[%c0_i32_5, %c0_i32_6] : memref<8x32xf32, #tpu.memory_space<any>> -> memref<8x32xf32, #tpu.memory_space<any>>
    %c0_i32_7 = arith.constant 0 : i32
    %c0_i32_8 = arith.constant 0 : i32
    %5 = tpu.memref_slice %arg1[%c0_i32_7, %c0_i32_8] : memref<8x32xf32, #tpu.memory_space<any>> -> memref<8x32xf32, #tpu.memory_space<any>>
    %6 = tpu.memref_slice %arg2[%c0_i32_4] : memref<1x!tpu.dma_semaphore, #tpu.memory_space<semaphore_mem>> -> memref<1x!tpu.dma_semaphore, #tpu.memory_space<semaphore_mem>>
    %7 = tpu.memref_squeeze %6 : memref<1x!tpu.dma_semaphore, #tpu.memory_space<semaphore_mem>> -> memref<!tpu.dma_semaphore, #tpu.memory_space<semaphore_mem>>
    tpu.wait_dma2 semaphore(%7 : memref<!tpu.dma_semaphore, #tpu.memory_space<semaphore_mem>>) src(%4 : memref<8x32xf32, #tpu.memory_space<any>>) dst(%5 : memref<8x32xf32, #tpu.memory_space<any>>)
    return
  }
}

</mosaic_0001>

<bundles_post_ra>
// kernel: tpu_custom_call.1
= control target key start
LH: loop header
LB: loop body
LE: loop exit
PB: predicated region body
PF: predicated region fallthrough
CT: control target
= control target key end

     0   :  { %s34_s6 = smov [#allocation2]   ;;  %s35_s7 = smov [#allocation3]   ;;  %s53_s0 = inlined_call_operand.hbm [shape: f32[8,32], index: 0, kind: input, shape index: {}]   ;;  %s54_s1 = inlined_call_operand.hbm [shape: f32[8,32], index: 1, kind: output, shape index: {}]  }
   0x1   :  { %s36_s8 = smov 0  }
   0x2   :  { %18 = dma.general %s53_s0, 128, %s54_s1, %s34_s6, %s35_s7, [#allocation4], %s36_s8, 0  }
   0x3   :  { %32 = dma.done.wait [#allocation2], 128 }
   0x4   :  { %33 = vsyncadd [#allocation2], 4294967168 }
   0x5   :  { %22 = vsyncmov [#allocation2] }
   0x8   :  { %s23_s13 = vpop.sfrf %22 }
   0x9   :  { %p28_p0 = scmp.ne.s32.totalorder %s23_s13, 0 }
   0xb   :  { %27 = shalt.err (%p28_p0)  }

</bundles_post_ra>
